<compile_context>
chip_gen: v5e
topology: v5e:2x2
jax: 0.10.0
libtpu: 0.0.40
codegen_flags: <defaults>
</compile_context>

<pallas_src>
import jax
import jax.numpy as jnp
from jax.experimental import pallas as pl
from jax.experimental.pallas import tpu as pltpu


def _fp4_e2m1_quant(a):
    """Round |scaled value| to the nearest E2M1 magnitude {0,.5,1,1.5,2,3,4,6}."""
    return jnp.where(a < 0.25, 0.0,
           jnp.where(a < 0.75, 0.5,
           jnp.where(a < 1.25, 1.0,
           jnp.where(a < 1.75, 1.5,
           jnp.where(a < 2.5, 2.0,
           jnp.where(a < 3.5, 3.0,
           jnp.where(a < 5.0, 4.0, 6.0)))))))


def fp4_linear_kernel(x_ref, w_ref, inv_s_ref, s_ref, b_ref, o_ref,
                      acc_ref, wq_ref):
    # grid = (j, i, k): output-column block j outermost, row block i, then
    # reduction block k innermost.
    i = pl.program_id(1)
    k = pl.program_id(2)

    @pl.when(k == 0)
    def _():
        acc_ref[...] = jnp.zeros_like(acc_ref)

    # Fake-FP4 dequantize this (tk, tn) weight tile only on the first row-tile
    # pass of each output-column block; cache the bf16 result in VMEM and
    # reuse it for every other row tile (amortizes the quant chain over M).
    @pl.when(i == 0)
    def _():
        w = w_ref[...].astype(jnp.float32)                     # (tk, tn)
        ws = w * inv_s_ref[...].astype(jnp.float32)            # mul, not div
        mag = _fp4_e2m1_quant(jnp.abs(ws))
        wq = jnp.where(ws < 0.0, -mag, mag) * s_ref[...].astype(jnp.float32)
        wq_ref[k] = wq.astype(jnp.bfloat16)

    # bf16 MXU operands (E2M1 magnitudes are exact in bf16), f32 accumulator.
    acc_ref[...] += jnp.dot(
        x_ref[...].astype(jnp.bfloat16),
        wq_ref[k],
        preferred_element_type=jnp.float32,
    )

    @pl.when(k == pl.num_programs(2) - 1)
    def _():
        o_ref[...] = (acc_ref[...] + b_ref[...].astype(jnp.float32)
                      ).astype(o_ref.dtype)


def fp4_weight_scales(weight):
    """Per-output-channel absmax/6 scale + reciprocal.

    Compute once per weight update and pass to fp4_linear(): weights are
    static between optimizer steps, so this avoids an extra full HBM read of
    the weight (and a vector divide in-kernel) on every forward.
    """
    absmax = jnp.max(jnp.abs(weight), axis=0, keepdims=True)
    scale = jnp.maximum(absmax / 6.0, 1e-12).astype(jnp.float32)
    inv_scale = (1.0 / scale).astype(jnp.float32)
    return scale, inv_scale


def _pick_tile(dim, pref, align):
    """Largest tile <= pref that divides dim and is `align`-aligned.

    Falls back to the full dimension (always a legal block extent).
    """
    if dim <= pref:
        return dim
    t = (min(pref, dim) // align) * align
    while t >= align:
        if dim % t == 0:
            return t
        t -= align
    return dim


def fp4_linear(x, weight, bias, scale=None, inv_scale=None, *,
               tm=256, tn=256, tk=512):
    M, K = x.shape
    K2, N = weight.shape
    assert K == K2 and bias.shape == (N,)

    if scale is None or inv_scale is None:
        scale, inv_scale = fp4_weight_scales(weight)
    bias2d = bias.reshape(1, N).astype(jnp.float32)

    # Alignment-aware tile selection (sublane mult-of-8, lane mult-of-128, or
    # the full dim), clamped to the actual problem size.
    tm = _pick_tile(M, tm, 8)
    tn = _pick_tile(N, tn, 128)
    tk = _pick_tile(K, tk, 128)

    # Keep the persistent dequantized-weight cache (K x tn bf16) bounded.
    budget = 8 * 1024 * 1024
    while K * tn * 2 > budget and tn > 128:
        new_tn = _pick_tile(N, tn // 2, 128)
        if new_tn >= tn:
            break
        tn = new_tn

    assert M % tm == 0 and N % tn == 0 and K % tk == 0
    nk = K // tk
    grid = (N // tn, M // tm, nk)  # (j, i, k)

    return pl.pallas_call(
        fp4_linear_kernel,
        out_shape=jax.ShapeDtypeStruct((M, N), x.dtype),
        grid_spec=pltpu.PrefetchScalarGridSpec(
            num_scalar_prefetch=0,
            grid=grid,
            in_specs=[
                pl.BlockSpec((tm, tk), lambda j, i, k: (i, k)),   # x
                pl.BlockSpec((tk, tn), lambda j, i, k: (k, j)),   # weight
                pl.BlockSpec((1, tn), lambda j, i, k: (0, j)),    # 1/scale
                pl.BlockSpec((1, tn), lambda j, i, k: (0, j)),    # scale
                pl.BlockSpec((1, tn), lambda j, i, k: (0, j)),    # bias
            ],
            out_specs=pl.BlockSpec((tm, tn), lambda j, i, k: (i, j)),
            scratch_shapes=[
                pltpu.VMEM((tm, tn), jnp.float32),        # f32 accumulator
                pltpu.VMEM((nk, tk, tn), jnp.bfloat16),   # dequant weight cache
            ],
        ),
        compiler_params=pltpu.CompilerParams(
            # j is "parallel" (megacore split on v7x). i MUST stay "arbitrary":
            # the dequant cache is filled at i == 0, so the i axis cannot be
            # sharded across TensorCores.
            dimension_semantics=("parallel", "arbitrary", "arbitrary"),
        ),
    )(x, weight, inv_scale, scale, bias2d)


def fp4_linear_ref(x, weight, bias):
    scale, inv_scale = fp4_weight_scales(weight)
    ws = weight * inv_scale
    wq = jnp.where(ws < 0.0, -1.0, 1.0) * _fp4_e2m1_quant(jnp.abs(ws)) * scale
    return x @ wq + bias[None, :]


if __name__ == "__main__":
    key = jax.random.PRNGKey(0)
    kx, kw = jax.random.split(key)

    batch, in_features, out_features = 8, 256, 128
    x = jax.random.normal(kx, (batch, in_features), dtype=jnp.float32)
    # Deterministic parameter init mirroring torch.randn / torch.zeros.
    weight = jax.random.normal(kw, (in_features, out_features), dtype=jnp.float32)
    bias = jnp.zeros((out_features,), dtype=jnp.float32)

    # Scales are hoisted out of the forward (cached alongside the weight).
    scale, inv_scale = fp4_weight_scales(weight)

    out = fp4_linear(x, weight, bias, scale, inv_scale)
    out = jax.block_until_ready(out)

    ref = fp4_linear_ref(x, weight, bias)
    assert out.shape == (batch, out_features)
    # Kernel feeds the MXU bf16 operands (f32 accumulation); tolerance covers
    # bf16 rounding of x and the dequantized weight over K=256 accumulations.
    assert jnp.allclose(out, ref, atol=2e-1, rtol=2e-2), (
        float(jnp.max(jnp.abs(out - ref))))

    print("KERNEL_OK")
</pallas_src>

<mosaic_0001>
module attributes {stable_mosaic.version = 11 : i64} {
  func.func @fp4_linear_kernel(%arg0: i32, %arg1: i32, %arg2: i32, %arg3: memref<8x256xf32, #tpu.memory_space<vmem>>, %arg4: memref<256x128xf32, #tpu.memory_space<vmem>>, %arg5: memref<1x128xf32, #tpu.memory_space<vmem>>, %arg6: memref<1x128xf32, #tpu.memory_space<vmem>>, %arg7: memref<1x128xf32, #tpu.memory_space<vmem>>, %arg8: memref<8x128xf32, #tpu.memory_space<vmem>>, %arg9: memref<8x128xf32, #tpu.memory_space<vmem>>, %arg10: memref<1x256x128xbf16, #tpu.memory_space<vmem>>) attributes {dimension_semantics = [#tpu.dimension_semantics<parallel>, #tpu.dimension_semantics<arbitrary>, #tpu.dimension_semantics<arbitrary>], iteration_bounds = array<i64: 1, 1, 1>, scalar_prefetch = 0 : i64, scratch_operands = 2 : i64, tpu.core_type = #tpu.core_type<tc>, window_params = [{transform_indices = @transform_0, window_bounds = array<i64: 8, 256>}, {transform_indices = @transform_1, window_bounds = array<i64: 256, 128>}, {transform_indices = @transform_2, window_bounds = array<i64: 1, 128>}, {transform_indices = @transform_3, window_bounds = array<i64: 1, 128>}, {transform_indices = @transform_4, window_bounds = array<i64: 1, 128>}, {transform_indices = @transform_5, window_bounds = array<i64: 8, 128>}]} {
    %c0_i32 = arith.constant 0 : i32
    %0 = arith.cmpi eq, %arg2, %c0_i32 : i32
    %1 = arith.extui %0 : i1 to i32
    %c0_i32_0 = arith.constant 0 : i32
    %2 = arith.cmpi ne, %1, %c0_i32_0 : i32
    scf.if %2 {
      %cst_12 = arith.constant 0.000000e+00 : f32
      %18 = vector.broadcast %cst_12 : f32 to vector<8x128xf32>
      %c0_13 = arith.constant 0 : index
      %c0_14 = arith.constant 0 : index
      %19 = vector.load %arg9[%c0_13, %c0_14] : memref<8x128xf32, #tpu.memory_space<vmem>>, vector<8x128xf32>
      tpu.vector_store %arg9[%c0_13, %c0_14], %18 {strides = array<i32>} : memref<8x128xf32, #tpu.memory_space<vmem>>, vector<8x128xf32>,
    } else {
    }
    %c0_i32_1 = arith.constant 0 : i32
    %3 = arith.cmpi eq, %arg1, %c0_i32_1 : i32
    %4 = arith.extui %3 : i1 to i32
    %c0_i32_2 = arith.constant 0 : i32
    %5 = arith.cmpi ne, %4, %c0_i32_2 : i32
    scf.if %5 {
      %c0_12 = arith.constant 0 : index
      %c0_13 = arith.constant 0 : index
      %18 = vector.load %arg4[%c0_12, %c0_13] : memref<256x128xf32, #tpu.memory_space<vmem>>, vector<256x128xf32>
      %c0_14 = arith.constant 0 : index
      %c0_15 = arith.constant 0 : index
      %19 = vector.load %arg5[%c0_14, %c0_15] : memref<1x128xf32, #tpu.memory_space<vmem>>, vector<1x128xf32>
      %20 = vector.broadcast %19 : vector<1x128xf32> to vector<256x128xf32>
      %21 = arith.mulf %18, %20 : vector<256x128xf32>
      %22 = math.absf %21 : vector<256x128xf32>
      %cst_16 = arith.constant 2.500000e-01 : f32
      %23 = vector.broadcast %cst_16 : f32 to vector<256x128xf32>
      %24 = arith.cmpf olt, %22, %23 : vector<256x128xf32>
      %cst_17 = arith.constant 7.500000e-01 : f32
      %25 = vector.broadcast %cst_17 : f32 to vector<256x128xf32>
      %26 = arith.cmpf olt, %22, %25 : vector<256x128xf32>
      %cst_18 = arith.constant 1.250000e+00 : f32
      %27 = vector.broadcast %cst_18 : f32 to vector<256x128xf32>
      %28 = arith.cmpf olt, %22, %27 : vector<256x128xf32>
      %cst_19 = arith.constant 1.750000e+00 : f32
      %29 = vector.broadcast %cst_19 : f32 to vector<256x128xf32>
      %30 = arith.cmpf olt, %22, %29 : vector<256x128xf32>
      %cst_20 = arith.constant 2.500000e+00 : f32
      %31 = vector.broadcast %cst_20 : f32 to vector<256x128xf32>
      %32 = arith.cmpf olt, %22, %31 : vector<256x128xf32>
      %cst_21 = arith.constant 3.500000e+00 : f32
      %33 = vector.broadcast %cst_21 : f32 to vector<256x128xf32>
      %34 = arith.cmpf olt, %22, %33 : vector<256x128xf32>
      %cst_22 = arith.constant 5.000000e+00 : f32
      %35 = vector.broadcast %cst_22 : f32 to vector<256x128xf32>
      %36 = arith.cmpf olt, %22, %35 : vector<256x128xf32>
      %cst_23 = arith.constant 4.000000e+00 : f32
      %cst_24 = arith.constant 6.000000e+00 : f32
      %37 = vector.broadcast %cst_23 : f32 to vector<256x128xf32>
      %38 = vector.broadcast %cst_24 : f32 to vector<256x128xf32>
      %39 = arith.select %36, %37, %38 : vector<256x128xi1>, vector<256x128xf32>
      %cst_25 = arith.constant 3.000000e+00 : f32
      %40 = vector.broadcast %cst_25 : f32 to vector<256x128xf32>
      %41 = arith.select %34, %40, %39 : vector<256x128xi1>, vector<256x128xf32>
      %cst_26 = arith.constant 2.000000e+00 : f32
      %42 = vector.broadcast %cst_26 : f32 to vector<256x128xf32>
      %43 = arith.select %32, %42, %41 : vector<256x128xi1>, vector<256x128xf32>
      %cst_27 = arith.constant 1.500000e+00 : f32
      %44 = vector.broadcast %cst_27 : f32 to vector<256x128xf32>
      %45 = arith.select %30, %44, %43 : vector<256x128xi1>, vector<256x128xf32>
      %cst_28 = arith.constant 1.000000e+00 : f32
      %46 = vector.broadcast %cst_28 : f32 to vector<256x128xf32>
      %47 = arith.select %28, %46, %45 : vector<256x128xi1>, vector<256x128xf32>
      %cst_29 = arith.constant 5.000000e-01 : f32
      %48 = vector.broadcast %cst_29 : f32 to vector<256x128xf32>
      %49 = arith.select %26, %48, %47 : vector<256x128xi1>, vector<256x128xf32>
      %cst_30 = arith.constant 0.000000e+00 : f32
      %50 = vector.broadcast %cst_30 : f32 to vector<256x128xf32>
      %51 = arith.select %24, %50, %49 : vector<256x128xi1>, vector<256x128xf32>
      %cst_31 = arith.constant 0.000000e+00 : f32
      %52 = vector.broadcast %cst_31 : f32 to vector<256x128xf32>
      %53 = arith.cmpf olt, %21, %52 : vector<256x128xf32>
      %cst_32 = arith.constant 0.000000e+00 : f32
      %54 = vector.broadcast %cst_32 : f32 to vector<256x128xf32>
      %55 = arith.subf %54, %51 : vector<256x128xf32>
      %56 = arith.select %53, %55, %51 : vector<256x128xi1>, vector<256x128xf32>
      %c0_33 = arith.constant 0 : index
      %c0_34 = arith.constant 0 : index
      %57 = vector.load %arg6[%c0_33, %c0_34] : memref<1x128xf32, #tpu.memory_space<vmem>>, vector<1x128xf32>
      %58 = vector.broadcast %57 : vector<1x128xf32> to vector<256x128xf32>
      %59 = arith.mulf %56, %58 : vector<256x128xf32>
      %60 = arith.truncf %59 : vector<256x128xf32> to vector<256x128xbf16>
      %61 = arith.index_cast %arg2 : i32 to index
      %c0_35 = arith.constant 0 : index
      %c0_36 = arith.constant 0 : index
      %62 = vector.load %arg10[%61, %c0_35, %c0_36] : memref<1x256x128xbf16, #tpu.memory_space<vmem>>, vector<1x256x128xbf16>
      %63 = vector.shape_cast %62 : vector<1x256x128xbf16> to vector<256x128xbf16>
      %64 = vector.shape_cast %60 : vector<256x128xbf16> to vector<1x256x128xbf16>
      tpu.vector_store %arg10[%61, %c0_35, %c0_36], %64 {strides = array<i32>} : memref<1x256x128xbf16, #tpu.memory_space<vmem>>, vector<1x256x128xbf16>,
    } else {
    }
    %c0 = arith.constant 0 : index
    %c0_3 = arith.constant 0 : index
    %6 = vector.load %arg9[%c0, %c0_3] : memref<8x128xf32, #tpu.memory_space<vmem>>, vector<8x128xf32>
    %c0_4 = arith.constant 0 : index
    %c0_5 = arith.constant 0 : index
    %7 = vector.load %arg3[%c0_4, %c0_5] : memref<8x256xf32, #tpu.memory_space<vmem>>, vector<8x256xf32>
    %8 = arith.truncf %7 : vector<8x256xf32> to vector<8x256xbf16>
    %9 = arith.index_cast %arg2 : i32 to index
    %c0_6 = arith.constant 0 : index
    %c0_7 = arith.constant 0 : index
    %10 = vector.load %arg10[%9, %c0_6, %c0_7] : memref<1x256x128xbf16, #tpu.memory_space<vmem>>, vector<1x256x128xbf16>
    %11 = vector.shape_cast %10 : vector<1x256x128xbf16> to vector<256x128xbf16>
    %cst = arith.constant dense<0.000000e+00> : vector<8x128xf32>
    %12 = tpu.matmul %8, %11, %cst {dimension_numbers = #tpu.dot_dimension_numbers<[1], [0], [0], [1], [0, 0, 1, 1], [], []>} : vector<8x256xbf16>, vector<256x128xbf16>, vector<8x128xf32> -> vector<8x128xf32>
    %13 = arith.addf %6, %12 : vector<8x128xf32>
    %c0_8 = arith.constant 0 : index
    %c0_9 = arith.constant 0 : index
    %14 = vector.load %arg9[%c0_8, %c0_9] : memref<8x128xf32, #tpu.memory_space<vmem>>, vector<8x128xf32>
    tpu.vector_store %arg9[%c0_8, %c0_9], %13 {strides = array<i32>} : memref<8x128xf32, #tpu.memory_space<vmem>>, vector<8x128xf32>,
    %c0_i32_10 = arith.constant 0 : i32
    %15 = arith.cmpi eq, %arg2, %c0_i32_10 : i32
    %16 = arith.extui %15 : i1 to i32
    %c0_i32_11 = arith.constant 0 : i32
    %17 = arith.cmpi ne, %16, %c0_i32_11 : i32
    scf.if %17 {
      %c0_12 = arith.constant 0 : index
      %c0_13 = arith.constant 0 : index
      %18 = vector.load %arg9[%c0_12, %c0_13] : memref<8x128xf32, #tpu.memory_space<vmem>>, vector<8x128xf32>
      %c0_14 = arith.constant 0 : index
      %c0_15 = arith.constant 0 : index
      %19 = vector.load %arg7[%c0_14, %c0_15] : memref<1x128xf32, #tpu.memory_space<vmem>>, vector<1x128xf32>
      %20 = vector.broadcast %19 : vector<1x128xf32> to vector<8x128xf32>
      %21 = arith.addf %18, %20 : vector<8x128xf32>
      %c0_16 = arith.constant 0 : index
      %c0_17 = arith.constant 0 : index
      %22 = vector.load %arg8[%c0_16, %c0_17] : memref<8x128xf32, #tpu.memory_space<vmem>>, vector<8x128xf32>
      tpu.vector_store %arg8[%c0_16, %c0_17], %21 {strides = array<i32>} : memref<8x128xf32, #tpu.memory_space<vmem>>, vector<8x128xf32>,
    } else {
    }
    return
  }
  func.func @transform_0(%arg0: i32, %arg1: i32, %arg2: i32) -> (i32, i32) {
    %c0_i32 = arith.constant 0 : i32
    return %arg1, %arg2 : i32, i32
  }
  func.func @transform_1(%arg0: i32, %arg1: i32, %arg2: i32) -> (i32, i32) {
    %c0_i32 = arith.constant 0 : i32
    return %arg2, %arg0 : i32, i32
  }
  func.func @transform_2(%arg0: i32, %arg1: i32, %arg2: i32) -> (i32, i32) {
    %c0_i32 = arith.constant 0 : i32
    %c0_i32_0 = arith.constant 0 : i32
    return %c0_i32, %arg0 : i32, i32
  }
  func.func @transform_3(%arg0: i32, %arg1: i32, %arg2: i32) -> (i32, i32) {
    %c0_i32 = arith.constant 0 : i32
    %c0_i32_0 = arith.constant 0 : i32
    return %c0_i32, %arg0 : i32, i32
  }
  func.func @transform_4(%arg0: i32, %arg1: i32, %arg2: i32) -> (i32, i32) {
    %c0_i32 = arith.constant 0 : i32
    %c0_i32_0 = arith.constant 0 : i32
    return %c0_i32, %arg0 : i32, i32
  }
  func.func @transform_5(%arg0: i32, %arg1: i32, %arg2: i32) -> (i32, i32) {
    %c0_i32 = arith.constant 0 : i32
    return %arg1, %arg0 : i32, i32
  }
}

</mosaic_0001>

<bundles_post_ra>
// kernel: tpu_custom_call.1
= control target key start
LH: loop header
LB: loop body
LE: loop exit
PB: predicated region body
PF: predicated region fallthrough
CT: control target
= control target key end

     0   :  { %10 = vsyncpa [#allocation5], 0  ;;  %s1731_s0 = inlined_call_operand.hbm [shape: f32[8,256], index: 0, kind: input, shape index: {}]   ;;  %s1732_s1 = inlined_call_operand.hbm [shape: f32[256,128], index: 1, kind: input, shape index: {}]   ;;  %s1733_s2 = inlined_call_operand.vmem [shape: f32[1,128], index: 2, kind: input, shape index: {}]   ;;  %s1734_s3 = inlined_call_operand.vmem [shape: f32[1,128], index: 3, kind: input, shape index: {}]   ;;  %s1735_s4 = inlined_call_operand.vmem [shape: f32[1,128], index: 4, kind: input, shape index: {}]   ;;  %s1736_s5 = inlined_call_operand.hbm [shape: f32[8,128], index: 5, kind: output, shape index: {}]  }
   0x1   :  { %11 = vsyncpa [#allocation8], 0 }
   0x2   :  { %12 = vsyncpa [#allocation6], 0  ;;  %s18_s20 = sshll.u32 %s1731_s0, 4  ;;  %s1263_s21 = smov [#allocation4]   ;;  %s19_s20 = int_to_ptr.hbm [resolvable:$true] %s18_s20 }
   0x3   :  { %s20_s22 = sshll.u32 %s1263_s21, 4  ;;  %s28_s25 = sshll.u32 %s1732_s1, 4  ;;  %s21_s22 = int_to_ptr.vmem [resolvable:$true] %s20_s22  ;;  %s29_s25 = int_to_ptr.hbm [resolvable:$true] %s28_s25 }
   0x4   :  { %23 = dma.hbm_to_vmem [thread:$0]  %s19_s20, 256, %s21_s22, [#allocation5]  }
   0x5   :  { %s1264_s26 = smov [#allocation7]   ;;  %s1265_s28 = smov 128  }
   0x6   :  { %s30_s27 = sshll.u32 %s1264_s26, 4  ;;  %s1266_s29 = smov 8   ;;  %s31_s27 = int_to_ptr.vmem [resolvable:$true] %s30_s27 }
   0x7   :  { %36 = dma.hbm_to_vmem [thread:$0]  %s29_s25, 4096, %s31_s27, [#allocation8], %s1265_s28, %s1265_s28, %s1266_s29  }
   0x8   :  { %1257 = dma.done.wait [#allocation5], 256  }
   0x9   :  { %1258 = vsyncadd [#allocation5], 4294967040 }
   0xa   :  { %1259 = dma.done.wait [#allocation8], 4096  }
   0xb   :  { %1260 = vsyncadd [#allocation8], 4294963200  ;;  %v74_v0 = vld [vmem:[#allocation7 + $0x70] sm:$0xff]  ;;  %v75_v1 = vld [vmem:[#allocation7 + $0x78] sm:$0xff]  ;;  %v1267_v19 = vmov 6.0   ;;  %s1268_s11 = smov [#allocation9]  }
   0xc   :  { %v1308_v2 = vld [vmem:[%s1733_s2] ss:$0 sm:$0xff]  ;;  %v91_v4 = vld [vmem:[#allocation7 + $0xf8] sm:$0xff]  ;;  %v72_v9 = vld [vmem:[#allocation7 + $0x60] sm:$0xff]  ;;  %s986_s12 = sshll.u32 %s1268_s11, 4  ;;  %s988_s15 = sshll.u32 %s1736_s5, 4  ;;  %s987_s12 = int_to_ptr.vmem [resolvable:$true] %s986_s12  ;;  %s989_s15 = int_to_ptr.hbm [resolvable:$true] %s988_s15 }
   0xd   :  { %v90_v3 = vld [vmem:[#allocation7 + $0xf0] sm:$0xff]  ;;  %v1311_v5 = vmul.f32 %v1308_v2, %v74_v0  ;;  %v1314_v6 = vmul.f32 %v1308_v2, %v75_v1  ;;  %v1320_v8 = vmul.f32 %v1308_v2, %v91_v4  ;;  %v73_v10 = vld [vmem:[#allocation7 + $0x68] sm:$0xff]  ;;  %v88_v11 = vld [vmem:[#allocation7 + $0xe0] sm:$0xff]  ;;  %v1325_v14 = vmul.f32 %v1308_v2, %v72_v9 }
   0xe   :  { %v1317_v7 = vmul.f32 %v1308_v2, %v90_v3  ;;  %v1334_v17 = vmul.f32 %v1308_v2, %v73_v10  ;;  %v1337_v18 = vmul.f32 %v1308_v2, %v88_v11  ;;  %v1365_v34 = vld [vmem:[%s1734_s3] ss:$0 sm:$0xff]  ;;  %v89_v51 = vld [vmem:[#allocation7 + $0xe8] sm:$0xff] }
   0xf   :  { %v142_v12 = vand.u32 2147483647, %v1311_v5  ;;  %v143_v13 = vand.u32 2147483647, %v1314_v6  ;;  %v1331_v16 = vand.u32 2147483647, %v1320_v8  ;;  %v1397_v61 = vmul.f32 %v1308_v2, %v89_v51 }
  0x10   :  { %v1328_v15 = vand.u32 2147483647, %v1317_v7  ;;  %v140_v54 = vand.u32 2147483647, %v1325_v14  ;;  %v141_v58 = vand.u32 2147483647, %v1334_v17 }
  0x11   :  { %vm238_vm4 = vcmp.lt.f32.partialorder %v142_v12, 1.25  ;;  %vm239_vm5 = vcmp.lt.f32.partialorder %v143_v13, 1.25  ;;  %vm334_vm6 = vcmp.lt.f32.partialorder %v142_v12, 3.5  ;;  %vm335_vm7 = vcmp.lt.f32.partialorder %v143_v13, 3.5 }
  0x12   :  { %vm302_vm10 = vcmp.lt.f32.partialorder %v142_v12, 2.5  ;;  %vm303_vm11 = vcmp.lt.f32.partialorder %v143_v13, 2.5  ;;  %vm366_vm12 = vcmp.lt.f32.partialorder %v142_v12, 5.0  ;;  %vm367_vm13 = vcmp.lt.f32.partialorder %v143_v13, 5.0 }
  0x13   :  { %vm270_vm14 = vcmp.lt.f32.partialorder %v142_v12, 1.75  ;;  %vm271_vm15 = vcmp.lt.f32.partialorder %v143_v13, 1.75  ;;  %v398_v20 = vsel %vm366_vm12, 4.0, %v1267_v19  ;;  %v399_v21 = vsel %vm367_vm13, 4.0, %v1267_v19 }
  0x14   :  { %v430_v22 = vsel %vm334_vm6, 3.0, %v398_v20  ;;  %v431_v23 = vsel %vm335_vm7, 3.0, %v399_v21  ;;  %vm254_vm8 = vcmp.lt.f32.partialorder %v1328_v15, 1.25  ;;  %vm286_vm3 = vcmp.lt.f32.partialorder %v1328_v15, 1.75 }
  0x15   :  { %v462_v24 = vsel %vm302_vm10, 2.0, %v430_v22  ;;  %v463_v25 = vsel %vm303_vm11, 2.0, %v431_v23  ;;  %vm287_vm2 = vcmp.lt.f32.partialorder %v1331_v16, 1.75  ;;  %vm318_vm12 = vcmp.lt.f32.partialorder %v1328_v15, 2.5 }
  0x16   :  { %v494_v26 = vsel %vm270_vm14, 1.5, %v462_v24  ;;  %v495_v27 = vsel %vm271_vm15, 1.5, %v463_v25  ;;  %vm319_vm6 = vcmp.lt.f32.partialorder %v1331_v16, 2.5  ;;  %vm350_vm7 = vcmp.lt.f32.partialorder %v1328_v15, 3.5 }
  0x17   :  { %v526_v28 = vsel %vm238_vm4, 1.0, %v494_v26  ;;  %v527_v29 = vsel %vm239_vm5, 1.0, %v495_v27  ;;  %vm351_vm13 = vcmp.lt.f32.partialorder %v1331_v16, 3.5  ;;  %vm638_vm10 = vcmp.lt.f32.partialorder %v1317_v7, 0.0  ;;  %v70_v27 = vld [vmem:[#allocation7 + $0x50] sm:$0xff] }
  0x18   :  { %vm1737_vm11 = vcmp.lt.f32.partialorder %v142_v12, 0.75  ;;  %vm1738_vm0 = vcmp.lt.f32.partialorder %v143_v13, 0.75  ;;  %vm382_vm14 = vcmp.lt.f32.partialorder %v1328_v15, 5.0  ;;  %vm383_vm15 = vcmp.lt.f32.partialorder %v1331_v16, 5.0 }
  0x19   :  { %v558_v30 = vsel %vm1737_vm11, 0.5, %v526_v28  ;;  %v559_v31 = vsel %vm1738_vm0, 0.5, %v527_v29  ;;  %vm1739_vm1 = vcmp.lt.f32.partialorder %v142_v12, 0.25  ;;  %vm1740_vm9 = vcmp.lt.f32.partialorder %v143_v13, 0.25 }
  0x1a   :  { %v590_v32 = vsel %vm1739_vm1, 0.0, %v558_v30  ;;  %v591_v33 = vsel %vm1740_vm9, 0.0, %v559_v31  ;;  %v414_v35 = vsel %vm382_vm14, 4.0, %v1267_v19  ;;  %v415_v36 = vsel %vm383_vm15, 4.0, %v1267_v19  ;;  %v71_v30 = vld [vmem:[#allocation7 + $0x58] sm:$0xff] }
  0x1b   :  { %v654_v37 = vsub.f32 0.0, %v590_v32  ;;  %v655_v38 = vsub.f32 0.0, %v591_v33  ;;  %v446_v39 = vsel %vm350_vm7, 3.0, %v414_v35  ;;  %v447_v40 = vsel %vm351_vm13, 3.0, %v415_v36 }
  0x1c   :  { %vm222_vm0 = vcmp.lt.f32.partialorder %v1328_v15, 0.75  ;;  %vm223_vm4 = vcmp.lt.f32.partialorder %v1331_v16, 0.75  ;;  %v478_v41 = vsel %vm318_vm12, 2.0, %v446_v39  ;;  %v479_v42 = vsel %vm319_vm6, 2.0, %v447_v40 }
  0x1d   :  { %vm1741_vm1 = vcmp.lt.f32.partialorder %v1311_v5, 0.0  ;;  %vm1742_vm5 = vcmp.lt.f32.partialorder %v1314_v6, 0.0  ;;  %v510_v45 = vsel %vm286_vm3, 1.5, %v478_v41  ;;  %v511_v46 = vsel %vm287_vm2, 1.5, %v479_v42 }
  0x1e   :  { %v686_v43 = vsel %vm1741_vm1, %v654_v37, %v590_v32  ;;  %v687_v44 = vsel %vm1742_vm5, %v655_v38, %v591_v33  ;;  %v542_v49 = vsel %vm254_vm8, 1.0, %v510_v45  ;;  %vm1743_vm9 = vcmp.lt.f32.partialorder %v1331_v16, 1.25  ;;  %v86_v45 = vld [vmem:[#allocation7 + $0xd0] sm:$0xff] }
  0x1f   :  { %v722_v47 = vmul.f32 %v1365_v34, %v686_v43  ;;  %v723_v48 = vmul.f32 %v1365_v34, %v687_v44  ;;  %v543_v50 = vsel %vm1743_vm9, 1.0, %v511_v46  ;;  %v574_v52 = vsel %vm222_vm0, 0.5, %v542_v49 }
  0x20   :  { %v575_v53 = vsel %vm223_vm4, 0.5, %v543_v50  ;;  %vm639_vm12 = vcmp.lt.f32.partialorder %v1320_v8, 0.0  ;;  %vm1744_vm2 = vcmp.lt.f32.partialorder %v1328_v15, 0.25  ;;  %vm1745_vm3 = vcmp.lt.f32.partialorder %v1331_v16, 0.25 }
  0x21   :  { %v1117_v55 = vpack.c.bf16 %v723_v48, %v722_v47  ;;  %v606_v56 = vsel %vm1744_vm2, 0.0, %v574_v52  ;;  %v607_v57 = vsel %vm1745_vm3, 0.0, %v575_v53  ;;  %vm172_vm8 = vcmp.lt.f32.partialorder %v140_v54, 0.25 }
  0x22   :  { %v670_v59 = vsub.f32 0.0, %v606_v56  ;;  %v671_v60 = vsub.f32 0.0, %v607_v57  ;;  %vm173_vm6 = vcmp.lt.f32.partialorder %v141_v58, 0.25  ;;  %vm204_vm7 = vcmp.lt.f32.partialorder %v140_v54, 0.75 }
  0x23   :  { %1165 = vst [vmem:[#allocation3 + $0x48] sm:$0xff] %v1117_v55   ;;  %vm205_vm13 = vcmp.lt.f32.partialorder %v141_v58, 0.75  ;;  %vm236_vm11 = vcmp.lt.f32.partialorder %v140_v54, 1.25  ;;  %vm300_vm14 = vcmp.lt.f32.partialorder %v140_v54, 2.5  ;;  %vm332_vm15 = vcmp.lt.f32.partialorder %v140_v54, 3.5 }
  0x24   :  { %v702_v62 = vsel %vm638_vm10, %v670_v59, %v606_v56  ;;  %v703_v63 = vsel %vm639_vm12, %v671_v60, %v607_v57  ;;  %vm333_vm0 = vcmp.lt.f32.partialorder %v141_v58, 3.5  ;;  %vm364_vm4 = vcmp.lt.f32.partialorder %v140_v54, 5.0  ;;  %v87_v57 = vld [vmem:[#allocation7 + $0xd8] sm:$0xff] }
  0x25   :  { %v738_v0 = vmul.f32 %v1365_v34, %v702_v62  ;;  %v739_v1 = vmul.f32 %v1365_v34, %v703_v63  ;;  %vm268_vm1 = vcmp.lt.f32.partialorder %v140_v54, 1.75  ;;  %vm301_vm5 = vcmp.lt.f32.partialorder %v141_v58, 2.5 }
  0x26   :  { %vm365_vm9 = vcmp.lt.f32.partialorder %v141_v58, 5.0  ;;  %v396_v3 = vsel %vm364_vm4, 4.0, %v1267_v19  ;;  %vm269_vm2 = vcmp.lt.f32.partialorder %v141_v58, 1.75  ;;  %vm237_vm10 = vcmp.lt.f32.partialorder %v141_v58, 1.25 }
  0x27   :  { %v1157_v4 = vpack.c.bf16 %v739_v1, %v738_v0  ;;  %v397_v5 = vsel %vm365_vm9, 4.0, %v1267_v19  ;;  %v428_v6 = vsel %vm332_vm15, 3.0, %v396_v3  ;;  %v156_v9 = vand.u32 2147483647, %v1337_v18 }
  0x28   :  { %v429_v7 = vsel %vm333_vm0, 3.0, %v397_v5  ;;  %v460_v8 = vsel %vm300_vm14, 2.0, %v428_v6  ;;  %vm620_vm12 = vcmp.lt.f32.partialorder %v1325_v14, 0.0  ;;  %vm621_vm3 = vcmp.lt.f32.partialorder %v1334_v17, 0.0 }
  0x29   :  { %1173 = vst [vmem:[#allocation3 + $0x28] sm:$0xff] %v1157_v4   ;;  %v461_v10 = vsel %vm301_vm5, 2.0, %v429_v7  ;;  %v492_v11 = vsel %vm268_vm1, 1.5, %v460_v8  ;;  %v157_v16 = vand.u32 2147483647, %v1397_v61  ;;  %vm220_vm14 = vcmp.lt.f32.partialorder %v156_v9, 0.75 }
  0x2a   :  { %v1070_v12 = vld [vmem:[#allocation3 + $0x48] sm:$0xff]  ;;  %v493_v13 = vsel %vm269_vm2, 1.5, %v461_v10  ;;  %v524_v15 = vsel %vm236_vm11, 1.0, %v492_v11  ;;  %vm252_vm0 = vcmp.lt.f32.partialorder %v156_v9, 1.25  ;;  %vm284_vm1 = vcmp.lt.f32.partialorder %v156_v9, 1.75 }
  0x2b   :  { %v525_v20 = vsel %vm237_vm10, 1.0, %v493_v13  ;;  %v556_v21 = vsel %vm204_vm7, 0.5, %v524_v15  ;;  %943 = vmatpush.bf16.msra.mxu0 %v1070_v12  ;;  %vm253_vm4 = vcmp.lt.f32.partialorder %v157_v16, 1.25  ;;  %vm285_vm5 = vcmp.lt.f32.partialorder %v157_v16, 1.75 }
  0x2c   :  { %v557_v22 = vsel %vm205_vm13, 0.5, %v525_v20  ;;  %v588_v23 = vsel %vm172_vm8, 0.0, %v556_v21  ;;  %vm316_vm11 = vcmp.lt.f32.partialorder %v156_v9, 2.5  ;;  %vm348_vm9 = vcmp.lt.f32.partialorder %v156_v9, 3.5 }
  0x2d   :  { %v589_v24 = vsel %vm173_vm6, 0.0, %v557_v22  ;;  %v652_v25 = vsub.f32 0.0, %v588_v23  ;;  %vm349_vm2 = vcmp.lt.f32.partialorder %v157_v16, 3.5  ;;  %vm380_vm10 = vcmp.lt.f32.partialorder %v156_v9, 5.0  ;;  %v68_v22 = vld [vmem:[#allocation7 + $0x40] sm:$0xff] }
  0x2e   :  { %v653_v26 = vsub.f32 0.0, %v589_v24  ;;  %vm317_vm7 = vcmp.lt.f32.partialorder %v157_v16, 2.5  ;;  %vm381_vm15 = vcmp.lt.f32.partialorder %v157_v16, 5.0  ;;  %v412_v29 = vsel %vm380_vm10, 4.0, %v1267_v19 }
  0x2f   :  { %v684_v28 = vsel %vm620_vm12, %v652_v25, %v588_v23  ;;  %v413_v35 = vsel %vm381_vm15, 4.0, %v1267_v19  ;;  %v444_v36 = vsel %vm348_vm9, 3.0, %v412_v29  ;;  %v1427_v39 = vmul.f32 %v1308_v2, %v70_v27  ;;  %v69_v23 = vld [vmem:[#allocation7 + $0x48] sm:$0xff] }
  0x30   :  { %v1078_v31 = vld [vmem:[#allocation3 + $0x28] sm:$0xff]  ;;  %v685_v32 = vsel %vm621_vm3, %v653_v26, %v589_v24  ;;  %v720_v33 = vmul.f32 %v1365_v34, %v684_v28  ;;  %v445_v38 = vsel %vm349_vm2, 3.0, %v413_v35  ;;  %v476_v14 = vsel %vm316_vm11, 2.0, %v444_v36 }
  0x31   :  { %v721_v37 = vmul.f32 %v1365_v34, %v685_v32  ;;  %956 = vmatpush.bf16.msra.mxu1 %v1078_v31  ;;  %vm221_vm8 = vcmp.lt.f32.partialorder %v157_v16, 0.75  ;;  %v477_v40 = vsel %vm317_vm7, 2.0, %v445_v38  ;;  %v508_v41 = vsel %vm284_vm1, 1.5, %v476_v14 }
  0x32   :  { %v1431_v17 = vmul.f32 %v1308_v2, %v71_v30  ;;  %vm189_vm6 = vcmp.lt.f32.partialorder %v157_v16, 0.25  ;;  %v509_v43 = vsel %vm285_vm5, 1.5, %v477_v40  ;;  %v540_v44 = vsel %vm252_vm0, 1.0, %v508_v41 }
  0x33   :  { %v1112_v42 = vpack.c.bf16 %v721_v37, %v720_v33  ;;  %v541_v46 = vsel %vm253_vm4, 1.0, %v509_v43  ;;  %v572_v47 = vsel %vm220_vm14, 0.5, %v540_v44  ;;  %v138_v48 = vand.u32 2147483647, %v1427_v39 }
  0x34   :  { %v573_v49 = vsel %vm221_vm8, 0.5, %v541_v46  ;;  %vm1746_vm13 = vcmp.lt.f32.partialorder %v156_v9, 0.25  ;;  %vm636_vm12 = vcmp.lt.f32.partialorder %v1337_v18, 0.0  ;;  %v139_v51 = vand.u32 2147483647, %v1431_v17 }
  0x35   :  { %1164 = vst [vmem:[#allocation3 + $0x8] sm:$0xff] %v1112_v42   ;;  %v604_v50 = vsel %vm1746_vm13, 0.0, %v572_v47  ;;  %v605_v52 = vsel %vm189_vm6, 0.0, %v573_v49  ;;  %vm637_vm3 = vcmp.lt.f32.partialorder %v1397_v61, 0.0  ;;  %v1443_v54 = vmul.f32 %v1308_v2, %v86_v45 }
  0x36   :  { %v668_v53 = vsub.f32 0.0, %v604_v50  ;;  %v669_v55 = vsub.f32 0.0, %v605_v52  ;;  %vm170_vm15 = vcmp.lt.f32.partialorder %v138_v48, 0.25  ;;  %vm171_vm14 = vcmp.lt.f32.partialorder %v139_v51, 0.25 }
  0x37   :  { %vm202_vm0 = vcmp.lt.f32.partialorder %v138_v48, 0.75  ;;  %vm234_vm4 = vcmp.lt.f32.partialorder %v138_v48, 1.25  ;;  %vm266_vm1 = vcmp.lt.f32.partialorder %v138_v48, 1.75  ;;  %vm298_vm5 = vcmp.lt.f32.partialorder %v138_v48, 2.5 }
  0x38   :  { %v700_v56 = vsel %vm636_vm12, %v668_v53, %v604_v50  ;;  %v701_v58 = vsel %vm637_vm3, %v669_v55, %v605_v52  ;;  %vm330_vm11 = vcmp.lt.f32.partialorder %v138_v48, 3.5  ;;  %vm331_vm9 = vcmp.lt.f32.partialorder %v139_v51, 3.5 }
  0x39   :  { %v736_v18 = vmul.f32 %v1365_v34, %v700_v56  ;;  %vm618_vm2 = vcmp.lt.f32.partialorder %v1427_v39, 0.0  ;;  %v737_v59 = vmul.f32 %v1365_v34, %v701_v58  ;;  %vm299_vm10 = vcmp.lt.f32.partialorder %v139_v51, 2.5 }
  0x3a   :  { %vm362_vm7 = vcmp.lt.f32.partialorder %v138_v48, 5.0  ;;  %vm363_vm8 = vcmp.lt.f32.partialorder %v139_v51, 5.0  ;;  %vm267_vm6 = vcmp.lt.f32.partialorder %v139_v51, 1.75  ;;  %v1451_v62 = vmul.f32 %v1308_v2, %v87_v57 }
  0x3b   :  { %v394_v60 = vsel %vm362_vm7, 4.0, %v1267_v19  ;;  %v395_v61 = vsel %vm363_vm8, 4.0, %v1267_v19  ;;  %v1152_v0 = vpack.c.bf16 %v737_v59, %v736_v18  ;;  %vm235_vm13 = vcmp.lt.f32.partialorder %v139_v51, 1.25 }
  0x3c   :  { %v1069_v63 = vld [vmem:[#allocation3 + $0x8] sm:$0xff]  ;;  %v426_v1 = vsel %vm330_vm11, 3.0, %v394_v60  ;;  %v427_v3 = vsel %vm331_vm9, 3.0, %v395_v61  ;;  %vm203_vm12 = vcmp.lt.f32.partialorder %v139_v51, 0.75  ;;  %v154_v6 = vand.u32 2147483647, %v1443_v54 }
  0x3d   :  { %v458_v4 = vsel %vm298_vm5, 2.0, %v426_v1  ;;  %v459_v5 = vsel %vm299_vm10, 2.0, %v427_v3  ;;  %944 = vmatpush.bf16.msra.mxu0 %v1069_v63  ;;  %1172 = vst [vmem:[#allocation3 + $0x78] sm:$0xff] %v1152_v0   ;;  %vm619_vm3 = vcmp.lt.f32.partialorder %v1431_v17, 0.0  ;;  %v155_v9 = vand.u32 2147483647, %v1451_v62 }
  0x3e   :  { %v490_v7 = vsel %vm266_vm1, 1.5, %v458_v4  ;;  %v491_v8 = vsel %vm267_vm6, 1.5, %v459_v5  ;;  %vm282_vm1 = vcmp.lt.f32.partialorder %v154_v6, 1.75  ;;  %vm314_vm6 = vcmp.lt.f32.partialorder %v154_v6, 2.5  ;;  %v84_v17 = vld [vmem:[#allocation7 + $0xc0] sm:$0xff]  ;;  %v85_v51 = vld [vmem:[#allocation7 + $0xc8] sm:$0xff] }
  0x3f   :  { %v522_v10 = vsel %vm234_vm4, 1.0, %v490_v7  ;;  %v523_v11 = vsel %vm235_vm13, 1.0, %v491_v8  ;;  %vm219_vm5 = vcmp.lt.f32.partialorder %v155_v9, 0.75  ;;  %vm251_vm10 = vcmp.lt.f32.partialorder %v155_v9, 1.25 }
  0x40   :  { %v554_v12 = vsel %vm202_vm0, 0.5, %v522_v10  ;;  %v555_v13 = vsel %vm203_vm12, 0.5, %v523_v11  ;;  %vm283_vm8 = vcmp.lt.f32.partialorder %v155_v9, 1.75  ;;  %vm346_vm4 = vcmp.lt.f32.partialorder %v154_v6, 3.5 }
  0x41   :  { %v586_v15 = vsel %vm170_vm15, 0.0, %v554_v12  ;;  %v587_v16 = vsel %vm171_vm14, 0.0, %v555_v13  ;;  %vm315_vm13 = vcmp.lt.f32.partialorder %v155_v9, 2.5  ;;  %vm347_vm11 = vcmp.lt.f32.partialorder %v155_v9, 3.5 }
  0x42   :  { %v650_v20 = vsub.f32 0.0, %v586_v15  ;;  %v651_v21 = vsub.f32 0.0, %v587_v16  ;;  %vm378_vm9 = vcmp.lt.f32.partialorder %v154_v6, 5.0  ;;  %vm379_vm7 = vcmp.lt.f32.partialorder %v155_v9, 5.0 }
  0x43   :  { %v410_v26 = vsel %vm378_vm9, 4.0, %v1267_v19  ;;  %v411_v27 = vsel %vm379_vm7, 4.0, %v1267_v19  ;;  %v1475_v36 = vmul.f32 %v1308_v2, %v68_v22  ;;  %v1478_v37 = vmul.f32 %v1308_v2, %v69_v23 }
  0x44   :  { %v682_v24 = vsel %vm618_vm2, %v650_v20, %v586_v15  ;;  %v683_v25 = vsel %vm619_vm3, %v651_v21, %v587_v16  ;;  %v1077_v28 = vld [vmem:[#allocation3 + $0x78] sm:$0xff]  ;;  %v442_v31 = vsel %vm346_vm4, 3.0, %v410_v26  ;;  %v443_v32 = vsel %vm347_vm11, 3.0, %v411_v27  ;;  %v67_v16 = vld [vmem:[#allocation7 + $0x38] sm:$0xff] }
  0x45   :  { %v718_v29 = vmul.f32 %v1365_v34, %v682_v24  ;;  %v719_v30 = vmul.f32 %v1365_v34, %v683_v25  ;;  %v474_v33 = vsel %vm314_vm6, 2.0, %v442_v31  ;;  %v475_v35 = vsel %vm315_vm13, 2.0, %v443_v32  ;;  %957 = vmatpush.bf16.msra.mxu1 %v1077_v28 }
  0x46   :  { %vm187_vm15 = vcmp.lt.f32.partialorder %v155_v9, 0.25  ;;  %v506_v14 = vsel %vm282_vm1, 1.5, %v474_v33  ;;  %v507_v39 = vsel %vm283_vm8, 1.5, %v475_v35  ;;  %vm1747_vm14 = vcmp.lt.f32.partialorder %v154_v6, 1.25  ;;  %v66_v9 = vld [vmem:[#allocation7 + $0x30] sm:$0xff] }
  0x47   :  { %v1107_v38 = vpack.c.bf16 %v719_v30, %v718_v29  ;;  %v538_v40 = vsel %vm1747_vm14, 1.0, %v506_v14  ;;  %v539_v41 = vsel %vm251_vm10, 1.0, %v507_v39  ;;  %vm1748_vm0 = vcmp.lt.f32.partialorder %v154_v6, 0.75 }
  0x48   :  { %v570_v42 = vsel %vm1748_vm0, 0.5, %v538_v40  ;;  %v571_v43 = vsel %vm219_vm5, 0.5, %v539_v41  ;;  %vm634_vm2 = vcmp.lt.f32.partialorder %v1443_v54, 0.0  ;;  %vm635_vm12 = vcmp.lt.f32.partialorder %v1451_v62, 0.0 }
  0x49   :  { %1163 = vst [vmem:[#allocation3 + $0x68] sm:$0xff] %v1107_v38   ;;  %vm1749_vm3 = vcmp.lt.f32.partialorder %v154_v6, 0.25  ;;  %v603_v45 = vsel %vm187_vm15, 0.0, %v571_v43  ;;  %v136_v46 = vand.u32 2147483647, %v1475_v36  ;;  %v1492_v50 = vmul.f32 %v1308_v2, %v84_v17 }
  0x4a   :  { %v602_v44 = vsel %vm1749_vm3, 0.0, %v570_v42  ;;  %v137_v47 = vand.u32 2147483647, %v1478_v37  ;;  %v667_v49 = vsub.f32 0.0, %v603_v45  ;;  %v1499_v56 = vmul.f32 %v1308_v2, %v85_v51 }
  0x4b   :  { %v666_v48 = vsub.f32 0.0, %v602_v44  ;;  %vm168_vm11 = vcmp.lt.f32.partialorder %v136_v46, 0.25  ;;  %vm200_vm7 = vcmp.lt.f32.partialorder %v136_v46, 0.75  ;;  %vm232_vm5 = vcmp.lt.f32.partialorder %v136_v46, 1.25 }
  0x4c   :  { %vm169_vm9 = vcmp.lt.f32.partialorder %v137_v47, 0.25  ;;  %v699_v53 = vsel %vm635_vm12, %v667_v49, %v603_v45  ;;  %vm264_vm10 = vcmp.lt.f32.partialorder %v136_v46, 1.75  ;;  %vm296_vm1 = vcmp.lt.f32.partialorder %v136_v46, 2.5  ;;  %v82_v45 = vld [vmem:[#allocation7 + $0xb0] sm:$0xff] }
  0x4d   :  { %v698_v52 = vsel %vm634_vm2, %v666_v48, %v602_v44  ;;  %v735_v55 = vmul.f32 %v1365_v34, %v699_v53  ;;  %vm328_vm8 = vcmp.lt.f32.partialorder %v136_v46, 3.5  ;;  %vm329_vm6 = vcmp.lt.f32.partialorder %v137_v47, 3.5 }
  0x4e   :  { %v734_v54 = vmul.f32 %v1365_v34, %v698_v52  ;;  %vm297_vm15 = vcmp.lt.f32.partialorder %v137_v47, 2.5  ;;  %vm360_vm14 = vcmp.lt.f32.partialorder %v136_v46, 5.0  ;;  %vm361_vm0 = vcmp.lt.f32.partialorder %v137_v47, 5.0  ;;  %v83_v46 = vld [vmem:[#allocation7 + $0xb8] sm:$0xff] }
  0x4f   :  { %vm265_vm2 = vcmp.lt.f32.partialorder %v137_v47, 1.75  ;;  %v392_v18 = vsel %vm360_vm14, 4.0, %v1267_v19  ;;  %v393_v59 = vsel %vm361_vm0, 4.0, %v1267_v19  ;;  %vm233_vm12 = vcmp.lt.f32.partialorder %v137_v47, 1.25 }
  0x50   :  { %v1068_v57 = vld [vmem:[#allocation3 + $0x68] sm:$0xff]  ;;  %v1147_v58 = vpack.c.bf16 %v735_v55, %v734_v54  ;;  %v424_v60 = vsel %vm328_vm8, 3.0, %v392_v18  ;;  %v425_v61 = vsel %vm329_vm6, 3.0, %v393_v59  ;;  %v152_v62 = vand.u32 2147483647, %v1492_v50 }
  0x51   :  { %945 = vmatpush.bf16.msra.mxu0 %v1068_v57  ;;  %vm201_vm3 = vcmp.lt.f32.partialorder %v137_v47, 0.75  ;;  %v456_v63 = vsel %vm296_vm1, 2.0, %v424_v60  ;;  %v457_v0 = vsel %vm297_vm15, 2.0, %v425_v61  ;;  %v153_v1 = vand.u32 2147483647, %v1499_v56  ;;  %v64_v60 = vld [vmem:[#allocation7 + $0x20] sm:$0xff] }
  0x52   :  { %1171 = vst [vmem:[#allocation3 + $0x70] sm:$0xff] %v1147_v58   ;;  %v488_v3 = vsel %vm264_vm10, 1.5, %v456_v63  ;;  %v489_v4 = vsel %vm265_vm2, 1.5, %v457_v0  ;;  %vm184_vm14 = vcmp.lt.f32.partialorder %v152_v62, 0.25  ;;  %vm216_vm13 = vcmp.lt.f32.partialorder %v152_v62, 0.75 }
  0x53   :  { %v520_v5 = vsel %vm232_vm5, 1.0, %v488_v3  ;;  %v521_v6 = vsel %vm233_vm12, 1.0, %v489_v4  ;;  %vm248_vm8 = vcmp.lt.f32.partialorder %v152_v62, 1.25  ;;  %vm249_vm6 = vcmp.lt.f32.partialorder %v153_v1, 1.25 }
  0x54   :  { %v552_v7 = vsel %vm200_vm7, 0.5, %v520_v5  ;;  %v553_v8 = vsel %vm201_vm3, 0.5, %v521_v6  ;;  %vm280_vm0 = vcmp.lt.f32.partialorder %v152_v62, 1.75  ;;  %vm281_vm4 = vcmp.lt.f32.partialorder %v153_v1, 1.75 }
  0x55   :  { %v584_v10 = vsel %vm168_vm11, 0.0, %v552_v7  ;;  %v585_v11 = vsel %vm169_vm9, 0.0, %v553_v8  ;;  %vm312_vm1 = vcmp.lt.f32.partialorder %v152_v62, 2.5  ;;  %vm344_vm10 = vcmp.lt.f32.partialorder %v152_v62, 3.5 }
  0x56   :  { %v648_v12 = vsub.f32 0.0, %v584_v10  ;;  %v649_v13 = vsub.f32 0.0, %v585_v11  ;;  %vm345_vm15 = vcmp.lt.f32.partialorder %v153_v1, 3.5  ;;  %vm376_vm2 = vcmp.lt.f32.partialorder %v152_v62, 5.0 }
  0x57   :  { %vm313_vm5 = vcmp.lt.f32.partialorder %v153_v1, 2.5  ;;  %vm377_vm12 = vcmp.lt.f32.partialorder %v153_v1, 5.0  ;;  %v408_v15 = vsel %vm376_vm2, 4.0, %v1267_v19  ;;  %v1514_v20 = vmul.f32 %v1308_v2, %v66_v9 }
  0x58   :  { %vm1750_vm7 = vcmp.lt.f32.partialorder %v1475_v36, 0.0  ;;  %vm1751_vm11 = vcmp.lt.f32.partialorder %v1478_v37, 0.0  ;;  %v409_v24 = vsel %vm377_vm12, 4.0, %v1267_v19  ;;  %v440_v25 = vsel %vm344_vm10, 3.0, %v408_v15 }
  0x59   :  { %v1076_v21 = vld [vmem:[#allocation3 + $0x70] sm:$0xff]  ;;  %v680_v22 = vsel %vm1750_vm7, %v648_v12, %v584_v10  ;;  %v681_v23 = vsel %vm1751_vm11, %v649_v13, %v585_v11  ;;  %v441_v28 = vsel %vm345_vm15, 3.0, %v409_v24  ;;  %v472_v29 = vsel %vm312_vm1, 2.0, %v440_v25  ;;  %v65_v10 = vld [vmem:[#allocation7 + $0x28] sm:$0xff] }
  0x5a   :  { %v716_v26 = vmul.f32 %v1365_v34, %v680_v22  ;;  %v717_v27 = vmul.f32 %v1365_v34, %v681_v23  ;;  %958 = vmatpush.bf16.msra.mxu1 %v1076_v21  ;;  %vm217_vm9 = vcmp.lt.f32.partialorder %v153_v1, 0.75  ;;  %v473_v30 = vsel %vm313_vm5, 2.0, %v441_v28 }
  0x5b   :  { %v504_v31 = vsel %vm280_vm0, 1.5, %v472_v29  ;;  %v1527_v32 = vmul.f32 %v1308_v2, %v67_v16  ;;  %vm185_vm3 = vcmp.lt.f32.partialorder %v153_v1, 0.25  ;;  %v505_v35 = vsel %vm281_vm4, 1.5, %v473_v30 }
  0x5c   :  { %v1102_v33 = vpack.c.bf16 %v717_v27, %v716_v26  ;;  %v536_v36 = vsel %vm248_vm8, 1.0, %v504_v31  ;;  %v537_v37 = vsel %vm249_vm6, 1.0, %v505_v35  ;;  %v134_v14 = vand.u32 2147483647, %v1514_v20 }
  0x5d   :  { %v568_v38 = vsel %vm216_vm13, 0.5, %v536_v36  ;;  %v569_v39 = vsel %vm217_vm9, 0.5, %v537_v37  ;;  %vm632_vm0 = vcmp.lt.f32.partialorder %v1492_v50, 0.0  ;;  %v135_v41 = vand.u32 2147483647, %v1527_v32 }
  0x5e   :  { %1162 = vst [vmem:[#allocation3 + $0x50] sm:$0xff] %v1102_v33   ;;  %v600_v40 = vsel %vm184_vm14, 0.0, %v568_v38  ;;  %v601_v17 = vsel %vm185_vm3, 0.0, %v569_v39  ;;  %vm633_vm1 = vcmp.lt.f32.partialorder %v1499_v56, 0.0  ;;  %vm198_vm4 = vcmp.lt.f32.partialorder %v134_v14, 0.75 }
  0x5f   :  { %v664_v42 = vsub.f32 0.0, %v600_v40  ;;  %v665_v43 = vsub.f32 0.0, %v601_v17  ;;  %vm230_vm8 = vcmp.lt.f32.partialorder %v134_v14, 1.25  ;;  %vm262_vm6 = vcmp.lt.f32.partialorder %v134_v14, 1.75 }
  0x60   :  { %vm263_vm13 = vcmp.lt.f32.partialorder %v135_v41, 1.75  ;;  %vm294_vm10 = vcmp.lt.f32.partialorder %v134_v14, 2.5  ;;  %vm326_vm15 = vcmp.lt.f32.partialorder %v134_v14, 3.5  ;;  %vm614_vm2 = vcmp.lt.f32.partialorder %v1514_v20, 0.0 }
  0x61   :  { %v696_v44 = vsel %vm632_vm0, %v664_v42, %v600_v40  ;;  %v697_v47 = vsel %vm633_vm1, %v665_v43, %v601_v17  ;;  %vm327_vm14 = vcmp.lt.f32.partialorder %v135_v41, 3.5  ;;  %vm358_vm5 = vcmp.lt.f32.partialorder %v134_v14, 5.0  ;;  %v80_v40 = vld [vmem:[#allocation7 + $0xa0] sm:$0xff] }
  0x62   :  { %v732_v48 = vmul.f32 %v1365_v34, %v696_v44  ;;  %v733_v49 = vmul.f32 %v1365_v34, %v697_v47  ;;  %vm295_vm12 = vcmp.lt.f32.partialorder %v135_v41, 2.5  ;;  %vm359_vm7 = vcmp.lt.f32.partialorder %v135_v41, 5.0  ;;  %v81_v44 = vld [vmem:[#allocation7 + $0xa8] sm:$0xff] }
  0x63   :  { %v390_v50 = vsel %vm358_vm5, 4.0, %v1267_v19  ;;  %v391_v51 = vsel %vm359_vm7, 4.0, %v1267_v19  ;;  %v1544_v53 = vmul.f32 %v1308_v2, %v82_v45  ;;  %v1547_v54 = vmul.f32 %v1308_v2, %v83_v46 }
  0x64   :  { %v422_v52 = vsel %vm326_vm15, 3.0, %v390_v50  ;;  %v1142_v56 = vpack.c.bf16 %v733_v49, %v732_v48  ;;  %vm231_vm11 = vcmp.lt.f32.partialorder %v135_v41, 1.25  ;;  %v423_v57 = vsel %vm327_vm14, 3.0, %v391_v51 }
  0x65   :  { %v1067_v55 = vld [vmem:[#allocation3 + $0x50] sm:$0xff]  ;;  %v454_v58 = vsel %vm294_vm10, 2.0, %v422_v52  ;;  %vm166_vm9 = vcmp.lt.f32.partialorder %v134_v14, 0.25  ;;  %vm199_vm3 = vcmp.lt.f32.partialorder %v135_v41, 0.75  ;;  %v455_v18 = vsel %vm295_vm12, 2.0, %v423_v57 }
  0x66   :  { %v486_v59 = vsel %vm262_vm6, 1.5, %v454_v58  ;;  %946 = vmatpush.bf16.msra.mxu0 %v1067_v55  ;;  %1170 = vst [vmem:[#allocation3 + $0x60] sm:$0xff] %v1142_v56   ;;  %vm167_vm0 = vcmp.lt.f32.partialorder %v135_v41, 0.25  ;;  %v487_v61 = vsel %vm263_vm13, 1.5, %v455_v18  ;;  %v150_v63 = vand.u32 2147483647, %v1544_v53 }
  0x67   :  { %v518_v62 = vsel %vm230_vm8, 1.0, %v486_v59  ;;  %v519_v0 = vsel %vm231_vm11, 1.0, %v487_v61  ;;  %vm615_vm1 = vcmp.lt.f32.partialorder %v1527_v32, 0.0  ;;  %v151_v3 = vand.u32 2147483647, %v1547_v54 }
  0x68   :  { %v550_v1 = vsel %vm198_vm4, 0.5, %v518_v62  ;;  %v551_v4 = vsel %vm199_vm3, 0.5, %v519_v0  ;;  %vm214_vm6 = vcmp.lt.f32.partialorder %v150_v63, 0.75  ;;  %v1559_v6 = vmul.f32 %v1308_v2, %v64_v60 }
  0x69   :  { %v582_v5 = vsel %vm166_vm9, 0.0, %v550_v1  ;;  %v583_v7 = vsel %vm167_vm0, 0.0, %v551_v4  ;;  %vm215_vm13 = vcmp.lt.f32.partialorder %v151_v3, 0.75  ;;  %vm246_vm8 = vcmp.lt.f32.partialorder %v150_v63, 1.25  ;;  %v62_v1 = vld [vmem:[#allocation7 + $0x10] sm:$0xff] }
  0x6a   :  { %v646_v8 = vsub.f32 0.0, %v582_v5  ;;  %v647_v9 = vsub.f32 0.0, %v583_v7  ;;  %vm278_vm10 = vcmp.lt.f32.partialorder %v150_v63, 1.75  ;;  %vm279_vm15 = vcmp.lt.f32.partialorder %v151_v3, 1.75 }
  0x6b   :  { %vm310_vm14 = vcmp.lt.f32.partialorder %v150_v63, 2.5  ;;  %vm311_vm4 = vcmp.lt.f32.partialorder %v151_v3, 2.5  ;;  %vm342_vm5 = vcmp.lt.f32.partialorder %v150_v63, 3.5  ;;  %vm343_vm12 = vcmp.lt.f32.partialorder %v151_v3, 3.5 }
  0x6c   :  { %v678_v11 = vsel %vm614_vm2, %v646_v8, %v582_v5  ;;  %v679_v12 = vsel %vm615_vm1, %v647_v9, %v583_v7  ;;  %vm374_vm9 = vcmp.lt.f32.partialorder %v150_v63, 5.0  ;;  %vm375_vm3 = vcmp.lt.f32.partialorder %v151_v3, 5.0  ;;  %v1617_v8 = vld [vmem:[%s1733_s2] ss:$0 sm:$0xff] }
  0x6d   :  { %v714_v13 = vmul.f32 %v1365_v34, %v678_v11  ;;  %v1075_v15 = vld [vmem:[#allocation3 + $0x60] sm:$0xff]  ;;  %v715_v16 = vmul.f32 %v1365_v34, %v679_v12  ;;  %v406_v20 = vsel %vm374_vm9, 4.0, %v1267_v19  ;;  %v407_v21 = vsel %vm375_vm3, 4.0, %v1267_v19 }
  0x6e   :  { %v1572_v22 = vmul.f32 %v1308_v2, %v65_v10  ;;  %vm247_vm2 = vcmp.lt.f32.partialorder %v151_v3, 1.25  ;;  %v438_v23 = vsel %vm342_vm5, 3.0, %v406_v20  ;;  %v439_v24 = vsel %vm343_vm12, 3.0, %v407_v21  ;;  %959 = vmatpush.bf16.msra.mxu1 %v1075_v15 }
  0x6f   :  { %v132_v25 = vand.u32 2147483647, %v1559_v6  ;;  %v1097_v26 = vpack.c.bf16 %v715_v16, %v714_v13  ;;  %v470_v27 = vsel %vm310_vm14, 2.0, %v438_v23  ;;  %v471_v28 = vsel %vm311_vm4, 2.0, %v439_v24  ;;  %v78_v16 = vld [vmem:[#allocation7 + $0x90] sm:$0xff] }
  0x70   :  { %v133_v29 = vand.u32 2147483647, %v1572_v22  ;;  %vm182_vm0 = vcmp.lt.f32.partialorder %v150_v63, 0.25  ;;  %vm183_vm1 = vcmp.lt.f32.partialorder %v151_v3, 0.25  ;;  %v502_v30 = vsel %vm278_vm10, 1.5, %v470_v27  ;;  %v63_v3 = vld [vmem:[#allocation7 + $0x18] sm:$0xff] }
  0x71   :  { %v503_v31 = vsel %vm279_vm15, 1.5, %v471_v28  ;;  %1161 = vst [vmem:[#allocation3 + $0x18] sm:$0xff] %v1097_v26   ;;  %v534_v32 = vsel %vm246_vm8, 1.0, %v502_v30  ;;  %vm196_vm9 = vcmp.lt.f32.partialorder %v132_v25, 0.75  ;;  %vm228_vm14 = vcmp.lt.f32.partialorder %v132_v25, 1.25 }
  0x72   :  { %v535_v33 = vsel %vm247_vm2, 1.0, %v503_v31  ;;  %v566_v35 = vsel %vm214_vm6, 0.5, %v534_v32  ;;  %vm229_vm4 = vcmp.lt.f32.partialorder %v133_v29, 1.25  ;;  %vm260_vm3 = vcmp.lt.f32.partialorder %v132_v25, 1.75 }
  0x73   :  { %v567_v36 = vsel %vm215_vm13, 0.5, %v535_v33  ;;  %v598_v37 = vsel %vm182_vm0, 0.0, %v566_v35  ;;  %vm261_vm11 = vcmp.lt.f32.partialorder %v133_v29, 1.75  ;;  %vm292_vm10 = vcmp.lt.f32.partialorder %v132_v25, 2.5 }
  0x74   :  { %v599_v38 = vsel %vm183_vm1, 0.0, %v567_v36  ;;  %v662_v14 = vsub.f32 0.0, %v598_v37  ;;  %vm293_vm15 = vcmp.lt.f32.partialorder %v133_v29, 2.5  ;;  %vm324_vm7 = vcmp.lt.f32.partialorder %v132_v25, 3.5 }
  0x75   :  { %v663_v39 = vsub.f32 0.0, %v599_v38  ;;  %vm325_vm8 = vcmp.lt.f32.partialorder %v133_v29, 3.5  ;;  %vm356_vm2 = vcmp.lt.f32.partialorder %v132_v25, 5.0  ;;  %vm357_vm5 = vcmp.lt.f32.partialorder %v133_v29, 5.0 }
  0x76   :  { %vm1752_vm12 = vcmp.lt.f32.partialorder %v1544_v53, 0.0  ;;  %vm1753_vm6 = vcmp.lt.f32.partialorder %v1547_v54, 0.0  ;;  %v388_v42 = vsel %vm356_vm2, 4.0, %v1267_v19  ;;  %v389_v43 = vsel %vm357_vm5, 4.0, %v1267_v19 }
  0x77   :  { %v694_v41 = vsel %vm1752_vm12, %v662_v14, %v598_v37  ;;  %v695_v17 = vsel %vm1753_vm6, %v663_v39, %v599_v38  ;;  %v420_v47 = vsel %vm324_vm7, 3.0, %v388_v42  ;;  %v421_v48 = vsel %vm325_vm8, 3.0, %v389_v43  ;;  %v79_v38 = vld [vmem:[#allocation7 + $0x98] sm:$0xff] }
  0x78   :  { %v730_v45 = vmul.f32 %v1365_v34, %v694_v41  ;;  %v731_v46 = vmul.f32 %v1365_v34, %v695_v17  ;;  %v1066_v49 = vld [vmem:[#allocation3 + $0x18] sm:$0xff]  ;;  %vm197_vm13 = vcmp.lt.f32.partialorder %v133_v29, 0.75  ;;  %v452_v50 = vsel %vm292_vm10, 2.0, %v420_v47 }
  0x79   :  { %v453_v51 = vsel %vm293_vm15, 2.0, %v421_v48  ;;  %v1594_v52 = vmul.f32 %v1308_v2, %v80_v40  ;;  %v484_v54 = vsel %vm260_vm3, 1.5, %v452_v50  ;;  %v1599_v56 = vmul.f32 %v1308_v2, %v81_v44  ;;  %947 = vmatpush.bf16.msra.mxu0 %v1066_v49 }
  0x7a   :  { %v1137_v53 = vpack.c.bf16 %v731_v46, %v730_v45  ;;  %v485_v55 = vsel %vm261_vm11, 1.5, %v453_v51  ;;  %v516_v57 = vsel %vm228_vm14, 1.0, %v484_v54  ;;  %vm612_vm7 = vcmp.lt.f32.partialorder %v1559_v6, 0.0 }
  0x7b   :  { %v517_v58 = vsel %vm229_vm4, 1.0, %v485_v55  ;;  %v548_v18 = vsel %vm196_vm9, 0.5, %v516_v57  ;;  %vm613_vm0 = vcmp.lt.f32.partialorder %v1572_v22, 0.0  ;;  %vm1754_vm1 = vcmp.lt.f32.partialorder %v132_v25, 0.25 }
  0x7c   :  { %1169 = vst [vmem:[#allocation3 + $0x38] sm:$0xff] %v1137_v53   ;;  %v549_v59 = vsel %vm197_vm13, 0.5, %v517_v58  ;;  %v580_v60 = vsel %vm1754_vm1, 0.0, %v548_v18  ;;  %vm1755_vm5 = vcmp.lt.f32.partialorder %v133_v29, 0.25  ;;  %v148_v2 = vand.u32 2147483647, %v1594_v52 }
  0x7d   :  { %v581_v61 = vsel %vm1755_vm5, 0.0, %v549_v59  ;;  %v149_v62 = vand.u32 2147483647, %v1599_v56  ;;  %v644_v63 = vsub.f32 0.0, %v580_v60  ;;  %vm628_vm8 = vcmp.lt.f32.partialorder %v1594_v52, 0.0 }
  0x7e   :  { %v645_v0 = vsub.f32 0.0, %v581_v61  ;;  %vm180_vm11 = vcmp.lt.f32.partialorder %v148_v2, 0.25  ;;  %vm212_vm14 = vcmp.lt.f32.partialorder %v148_v2, 0.75  ;;  %vm276_vm4 = vcmp.lt.f32.partialorder %v148_v2, 1.75 }
  0x7f   :  { %vm181_vm12 = vcmp.lt.f32.partialorder %v149_v62, 0.25  ;;  %v676_v4 = vsel %vm612_vm7, %v644_v63, %v580_v60  ;;  %vm308_vm9 = vcmp.lt.f32.partialorder %v148_v2, 2.5  ;;  %vm309_vm3 = vcmp.lt.f32.partialorder %v149_v62, 2.5  ;;  %v60_v60 = vld [vmem:[#allocation7] sm:$0xff]  ;;  %v1666_v63 = vld [vmem:[%s1734_s3] ss:$0 sm:$0xff] }
  0x80   :  { %v677_v5 = vsel %vm613_vm0, %v645_v0, %v581_v61  ;;  %v712_v6 = vmul.f32 %v1365_v34, %v676_v4  ;;  %vm340_vm10 = vcmp.lt.f32.partialorder %v148_v2, 3.5  ;;  %vm341_vm15 = vcmp.lt.f32.partialorder %v149_v62, 3.5 }
  0x81   :  { %v713_v7 = vmul.f32 %v1365_v34, %v677_v5  ;;  %vm372_vm6 = vcmp.lt.f32.partialorder %v148_v2, 5.0  ;;  %vm373_vm13 = vcmp.lt.f32.partialorder %v149_v62, 5.0  ;;  %v1620_v9 = vmul.f32 %v1617_v8, %v62_v1 }
  0x82   :  { %v1623_v10 = vmul.f32 %v1617_v8, %v63_v3  ;;  %vm277_vm7 = vcmp.lt.f32.partialorder %v149_v62, 1.75  ;;  %v404_v13 = vsel %vm372_vm6, 4.0, %v1267_v19  ;;  %v405_v15 = vsel %vm373_vm13, 4.0, %v1267_v19 }
  0x83   :  { %v1074_v11 = vld [vmem:[#allocation3 + $0x38] sm:$0xff]  ;;  %v1092_v12 = vpack.c.bf16 %v713_v7, %v712_v6  ;;  %vm244_vm0 = vcmp.lt.f32.partialorder %v148_v2, 1.25  ;;  %vm245_vm1 = vcmp.lt.f32.partialorder %v149_v62, 1.25  ;;  %v436_v20 = vsel %vm340_vm10, 3.0, %v404_v13 }
  0x84   :  { %v437_v21 = vsel %vm341_vm15, 3.0, %v405_v15  ;;  %960 = vmatpush.bf16.msra.mxu1 %v1074_v11  ;;  %vm213_vm5 = vcmp.lt.f32.partialorder %v149_v62, 0.75  ;;  %v468_v22 = vsel %vm308_vm9, 2.0, %v436_v20  ;;  %v130_v24 = vand.u32 2147483647, %v1620_v9  ;;  %v61_v62 = vld [vmem:[#allocation7 + $0x8] sm:$0xff] }
  0x85   :  { %1160 = vst [vmem:[#allocation3 + $0x58] sm:$0xff] %v1092_v12   ;;  %v469_v23 = vsel %vm309_vm3, 2.0, %v437_v21  ;;  %v500_v25 = vsel %vm276_vm4, 1.5, %v468_v22  ;;  %v131_v27 = vand.u32 2147483647, %v1623_v10  ;;  %v1635_v28 = vmul.f32 %v1617_v8, %v78_v16 }
  0x86   :  { %v501_v26 = vsel %vm277_vm7, 1.5, %v469_v23  ;;  %v532_v29 = vsel %vm244_vm0, 1.0, %v500_v25  ;;  %vm194_vm15 = vcmp.lt.f32.partialorder %v130_v24, 0.75  ;;  %vm226_vm9 = vcmp.lt.f32.partialorder %v130_v24, 1.25 }
  0x87   :  { %v533_v30 = vsel %vm245_vm1, 1.0, %v501_v26  ;;  %v564_v31 = vsel %vm212_vm14, 0.5, %v532_v29  ;;  %vm227_vm6 = vcmp.lt.f32.partialorder %v131_v27, 1.25  ;;  %vm258_vm4 = vcmp.lt.f32.partialorder %v130_v24, 1.75 }
  0x88   :  { %v565_v32 = vsel %vm213_vm5, 0.5, %v533_v30  ;;  %v596_v33 = vsel %vm180_vm11, 0.0, %v564_v31  ;;  %vm259_vm3 = vcmp.lt.f32.partialorder %v131_v27, 1.75  ;;  %vm290_vm13 = vcmp.lt.f32.partialorder %v130_v24, 2.5  ;;  %v76_v31 = vld [vmem:[#allocation7 + $0x80] sm:$0xff] }
  0x89   :  { %v597_v35 = vsel %vm181_vm12, 0.0, %v565_v32  ;;  %v660_v36 = vsub.f32 0.0, %v596_v33  ;;  %vm291_vm7 = vcmp.lt.f32.partialorder %v131_v27, 2.5  ;;  %vm322_vm2 = vcmp.lt.f32.partialorder %v130_v24, 3.5 }
  0x8a   :  { %v661_v37 = vsub.f32 0.0, %v597_v35  ;;  %vm323_vm0 = vcmp.lt.f32.partialorder %v131_v27, 3.5  ;;  %vm354_vm1 = vcmp.lt.f32.partialorder %v130_v24, 5.0  ;;  %vm355_vm10 = vcmp.lt.f32.partialorder %v131_v27, 5.0 }
  0x8b   :  { %v692_v39 = vsel %vm628_vm8, %v660_v36, %v596_v33  ;;  %vm1756_vm14 = vcmp.lt.f32.partialorder %v1599_v56, 0.0  ;;  %v386_v41 = vsel %vm354_vm1, 4.0, %v1267_v19  ;;  %v387_v17 = vsel %vm355_vm10, 4.0, %v1267_v19 }
  0x8c   :  { %v1065_v14 = vld [vmem:[#allocation3 + $0x58] sm:$0xff]  ;;  %v693_v40 = vsel %vm1756_vm14, %v661_v37, %v597_v35  ;;  %v728_v42 = vmul.f32 %v1365_v34, %v692_v39  ;;  %v418_v44 = vsel %vm322_vm2, 3.0, %v386_v41  ;;  %v419_v45 = vsel %vm323_vm0, 3.0, %v387_v17 }
  0x8d   :  { %v729_v43 = vmul.f32 %v1365_v34, %v693_v40  ;;  %948 = vmatpush.bf16.msra.mxu0 %v1065_v14  ;;  %vm195_vm11 = vcmp.lt.f32.partialorder %v131_v27, 0.75  ;;  %v450_v46 = vsel %vm290_vm13, 2.0, %v418_v44  ;;  %v451_v47 = vsel %vm291_vm7, 2.0, %v419_v45 }
  0x8e   :  { %v1651_v48 = vmul.f32 %v1617_v8, %v79_v38  ;;  %vm163_vm12 = vcmp.lt.f32.partialorder %v131_v27, 0.25  ;;  %v482_v50 = vsel %vm258_vm4, 1.5, %v450_v46  ;;  %v483_v51 = vsel %vm259_vm3, 1.5, %v451_v47 }
  0x8f   :  { %v1132_v49 = vpack.c.bf16 %v729_v43, %v728_v42  ;;  %v514_v52 = vsel %vm226_vm9, 1.0, %v482_v50  ;;  %v515_v34 = vsel %vm227_vm6, 1.0, %v483_v51  ;;  %v146_v53 = vand.u32 2147483647, %v1635_v28 }
  0x90   :  { %v546_v54 = vsel %vm194_vm15, 0.5, %v514_v52  ;;  %v547_v55 = vsel %vm195_vm11, 0.5, %v515_v34  ;;  %vm610_vm8 = vcmp.lt.f32.partialorder %v1620_v9, 0.0  ;;  %v147_v56 = vand.u32 2147483647, %v1651_v48 }
  0x91   :  { %1168 = vst [vmem:[#allocation3 + $0x10] sm:$0xff] %v1132_v49   ;;  %vm1757_vm2 = vcmp.lt.f32.partialorder %v130_v24, 0.25  ;;  %v579_v58 = vsel %vm163_vm12, 0.0, %v547_v55  ;;  %vm611_vm5 = vcmp.lt.f32.partialorder %v1623_v10, 0.0  ;;  %vm210_vm10 = vcmp.lt.f32.partialorder %v146_v53, 0.75 }
  0x92   :  { %v578_v57 = vsel %vm1757_vm2, 0.0, %v546_v54  ;;  %v643_v59 = vsub.f32 0.0, %v579_v58  ;;  %vm242_vm9 = vcmp.lt.f32.partialorder %v146_v53, 1.25  ;;  %vm243_vm6 = vcmp.lt.f32.partialorder %v147_v56, 1.25 }
  0x93   :  { %v642_v18 = vsub.f32 0.0, %v578_v57  ;;  %vm274_vm4 = vcmp.lt.f32.partialorder %v146_v53, 1.75  ;;  %vm306_vm3 = vcmp.lt.f32.partialorder %v146_v53, 2.5  ;;  %vm307_vm13 = vcmp.lt.f32.partialorder %v147_v56, 2.5 }
  0x94   :  { %vm338_vm7 = vcmp.lt.f32.partialorder %v146_v53, 3.5  ;;  %v675_v2 = vsel %vm611_vm5, %v643_v59, %v579_v58  ;;  %vm339_vm15 = vcmp.lt.f32.partialorder %v147_v56, 3.5  ;;  %vm370_vm0 = vcmp.lt.f32.partialorder %v146_v53, 5.0 }
  0x95   :  { %v674_v61 = vsel %vm610_vm8, %v642_v18, %v578_v57  ;;  %v711_v1 = vmul.f32 %v1666_v63, %v675_v2  ;;  %vm371_vm1 = vcmp.lt.f32.partialorder %v147_v56, 5.0  ;;  %v402_v3 = vsel %vm370_vm0, 4.0, %v1267_v19 }
  0x96   :  { %v710_v0 = vmul.f32 %v1666_v63, %v674_v61  ;;  %vm275_vm14 = vcmp.lt.f32.partialorder %v147_v56, 1.75  ;;  %v403_v4 = vsel %vm371_vm1, 4.0, %v1267_v19  ;;  %v434_v5 = vsel %vm338_vm7, 3.0, %v402_v3 }
  0x97   :  { %v1673_v6 = vmul.f32 %v1617_v8, %v60_v60  ;;  %v435_v10 = vsel %vm339_vm15, 3.0, %v403_v4  ;;  %v466_v11 = vsel %vm306_vm3, 2.0, %v434_v5  ;;  %v1677_v12 = vmul.f32 %v1617_v8, %v61_v62 }
  0x98   :  { %v1073_v7 = vld [vmem:[#allocation3 + $0x10] sm:$0xff]  ;;  %v1087_v9 = vpack.c.bf16 %v711_v1, %v710_v0  ;;  %vm178_vm11 = vcmp.lt.f32.partialorder %v146_v53, 0.25  ;;  %vm211_vm12 = vcmp.lt.f32.partialorder %v147_v56, 0.75  ;;  %v467_v13 = vsel %vm307_vm13, 2.0, %v435_v10 }
  0x99   :  { %v498_v15 = vsel %vm274_vm4, 1.5, %v466_v11  ;;  %961 = vmatpush.bf16.msra.mxu1 %v1073_v7  ;;  %vm179_vm8 = vcmp.lt.f32.partialorder %v147_v56, 0.25  ;;  %v499_v16 = vsel %vm275_vm14, 1.5, %v467_v13  ;;  %v128_v21 = vand.u32 2147483647, %v1673_v6 }
  0x9a   :  { %1159 = vst [vmem:[#allocation3] sm:$0xff] %v1087_v9   ;;  %v530_v20 = vsel %vm242_vm9, 1.0, %v498_v15  ;;  %v531_v22 = vsel %vm243_vm6, 1.0, %v499_v16  ;;  %vm626_vm2 = vcmp.lt.f32.partialorder %v1635_v28, 0.0  ;;  %v129_v24 = vand.u32 2147483647, %v1677_v12 }
  0x9b   :  { %v562_v23 = vsel %vm210_vm10, 0.5, %v530_v20  ;;  %v563_v25 = vsel %vm211_vm12, 0.5, %v531_v22  ;;  %vm627_vm5 = vcmp.lt.f32.partialorder %v1651_v48, 0.0  ;;  %vm160_vm4 = vcmp.lt.f32.partialorder %v128_v21, 0.25  ;;  %v77_v28 = vld [vmem:[#allocation7 + $0x88] sm:$0xff]  ;;  %v808_v16 = vld [vmem:[#allocation4] sm:$0xff] }
  0x9c   :  { %v594_v26 = vsel %vm178_vm11, 0.0, %v562_v23  ;;  %v595_v27 = vsel %vm179_vm8, 0.0, %v563_v25  ;;  %vm192_vm3 = vcmp.lt.f32.partialorder %v128_v21, 0.75  ;;  %vm224_vm13 = vcmp.lt.f32.partialorder %v128_v21, 1.25  ;;  %v809_v25 = vld [vmem:[#allocation4 + $0x8] sm:$0xff] }
  0x9d   :  { %v658_v29 = vsub.f32 0.0, %v594_v26  ;;  %v659_v30 = vsub.f32 0.0, %v595_v27  ;;  %vm256_vm9 = vcmp.lt.f32.partialorder %v128_v21, 1.75  ;;  %vm257_vm7 = vcmp.lt.f32.partialorder %v129_v24, 1.75 }
  0x9e   :  { %vm288_vm15 = vcmp.lt.f32.partialorder %v128_v21, 2.5  ;;  %vm289_vm10 = vcmp.lt.f32.partialorder %v129_v24, 2.5  ;;  %vm320_vm6 = vcmp.lt.f32.partialorder %v128_v21, 3.5  ;;  %vm321_vm0 = vcmp.lt.f32.partialorder %v129_v24, 3.5 }
  0x9f   :  { %v690_v32 = vsel %vm626_vm2, %v658_v29, %v594_v26  ;;  %v691_v33 = vsel %vm627_vm5, %v659_v30, %v595_v27  ;;  %vm352_vm1 = vcmp.lt.f32.partialorder %v128_v21, 5.0  ;;  %vm353_vm14 = vcmp.lt.f32.partialorder %v129_v24, 5.0 }
  0xa0   :  { %v726_v35 = vmul.f32 %v1666_v63, %v690_v32  ;;  %v727_v37 = vmul.f32 %v1666_v63, %v691_v33  ;;  %v384_v38 = vsel %vm352_vm1, 4.0, %v1267_v19  ;;  %v385_v14 = vsel %vm353_vm14, 4.0, %v1267_v19 }
  0xa1   :  { %v1064_v36 = vld [vmem:[#allocation3] sm:$0xff]  ;;  %v1696_v39 = vmul.f32 %v1617_v8, %v76_v31  ;;  %vm225_vm11 = vcmp.lt.f32.partialorder %v129_v24, 1.25  ;;  %v416_v40 = vsel %vm320_vm6, 3.0, %v384_v38  ;;  %v417_v41 = vsel %vm321_vm0, 3.0, %v385_v14 }
  0xa2   :  { %v1699_v17 = vmul.f32 %v1617_v8, %v77_v28  ;;  %949 = vmatpush.bf16.msra.mxu0 %v1064_v36  ;;  %v1127_v42 = vpack.c.bf16 %v727_v37, %v726_v35  ;;  %vm193_vm12 = vcmp.lt.f32.partialorder %v129_v24, 0.75  ;;  %v448_v43 = vsel %vm288_vm15, 2.0, %v416_v40  ;;  %v1182_v31 = vld [vmem:[%s1735_s4] ss:$0 sm:$0xff] }
  0xa3   :  { %v449_v44 = vsel %vm289_vm10, 2.0, %v417_v41  ;;  %vm161_vm8 = vcmp.lt.f32.partialorder %v129_v24, 0.25  ;;  %v480_v45 = vsel %vm256_vm9, 1.5, %v448_v43  ;;  %v144_v47 = vand.u32 2147483647, %v1696_v39 }
  0xa4   :  { %v481_v46 = vsel %vm257_vm7, 1.5, %v449_v44  ;;  %1167 = vst [vmem:[#allocation3 + $0x20] sm:$0xff] %v1127_v42   ;;  %v512_v48 = vsel %vm224_vm13, 1.0, %v480_v45  ;;  %v145_v8 = vand.u32 2147483647, %v1699_v17  ;;  %vm608_vm2 = vcmp.lt.f32.partialorder %v1673_v6, 0.0 }
  0xa5   :  { %v513_v49 = vsel %vm225_vm11, 1.0, %v481_v46  ;;  %v544_v50 = vsel %vm192_vm3, 0.5, %v512_v48  ;;  %vm609_vm5 = vcmp.lt.f32.partialorder %v1677_v12, 0.0  ;;  %vm208_vm9 = vcmp.lt.f32.partialorder %v144_v47, 0.75 }
  0xa6   :  { %v545_v51 = vsel %vm193_vm12, 0.5, %v513_v49  ;;  %v576_v52 = vsel %vm160_vm4, 0.0, %v544_v50  ;;  %vm272_vm7 = vcmp.lt.f32.partialorder %v144_v47, 1.75  ;;  %vm273_vm15 = vcmp.lt.f32.partialorder %v145_v8, 1.75 }
  0xa7   :  { %v577_v34 = vsel %vm161_vm8, 0.0, %v545_v51  ;;  %v640_v53 = vsub.f32 0.0, %v576_v52  ;;  %vm304_vm10 = vcmp.lt.f32.partialorder %v144_v47, 2.5  ;;  %vm305_vm13 = vcmp.lt.f32.partialorder %v145_v8, 2.5 }
  0xa8   :  { %v641_v54 = vsub.f32 0.0, %v577_v34  ;;  %vm336_vm6 = vcmp.lt.f32.partialorder %v144_v47, 3.5  ;;  %vm337_vm0 = vcmp.lt.f32.partialorder %v145_v8, 3.5  ;;  %vm368_vm3 = vcmp.lt.f32.partialorder %v144_v47, 5.0 }
  0xa9   :  { %v672_v55 = vsel %vm608_vm2, %v640_v53, %v576_v52  ;;  %vm369_vm1 = vcmp.lt.f32.partialorder %v145_v8, 5.0  ;;  %v400_v18 = vsel %vm368_vm3, 4.0, %v1267_v19  ;;  %vm240_vm4 = vcmp.lt.f32.partialorder %v144_v47, 1.25 }
  0xaa   :  { %v673_v56 = vsel %vm609_vm5, %v641_v54, %v577_v34  ;;  %v708_v57 = vmul.f32 %v1666_v63, %v672_v55  ;;  %v401_v59 = vsel %vm369_vm1, 4.0, %v1267_v19  ;;  %vm241_vm14 = vcmp.lt.f32.partialorder %v145_v8, 1.25 }
  0xab   :  { %v709_v58 = vmul.f32 %v1666_v63, %v673_v56  ;;  %v1072_v60 = vld [vmem:[#allocation3 + $0x20] sm:$0xff]  ;;  %v432_v61 = vsel %vm336_vm6, 3.0, %v400_v18  ;;  %v433_v2 = vsel %vm337_vm0, 3.0, %v401_v59  ;;  %vm209_vm11 = vcmp.lt.f32.partialorder %v145_v8, 0.75 }
  0xac   :  { %v464_v0 = vsel %vm304_vm10, 2.0, %v432_v61  ;;  %v465_v1 = vsel %vm305_vm13, 2.0, %v433_v2  ;;  %962 = vmatpush.bf16.msra.mxu1 %v1072_v60  ;;  %vm176_vm12 = vcmp.lt.f32.partialorder %v144_v47, 0.25  ;;  %vm177_vm8 = vcmp.lt.f32.partialorder %v145_v8, 0.25 }
  0xad   :  { %v1082_v62 = vpack.c.bf16 %v709_v58, %v708_v57  ;;  %v496_v3 = vsel %vm272_vm7, 1.5, %v464_v0  ;;  %v497_v4 = vsel %vm273_vm15, 1.5, %v465_v1  ;;  %vm624_vm2 = vcmp.lt.f32.partialorder %v1696_v39, 0.0 }
  0xae   :  { %v528_v19 = vsel %vm240_vm4, 1.0, %v496_v3  ;;  %v529_v5 = vsel %vm241_vm14, 1.0, %v497_v4  ;;  %vm625_vm5 = vcmp.lt.f32.partialorder %v1699_v17, 0.0  ;;  %v810_v24 = vpack.c.bf16 %v808_v16, %v808_v16 }
  0xaf   :  { %1083 = vst [vmem:[#allocation3 + $0x30] sm:$0xff] %v1082_v62   ;;  %v560_v6 = vsel %vm208_vm9, 0.5, %v528_v19  ;;  %v561_v7 = vsel %vm209_vm11, 0.5, %v529_v5  ;;  %v811_v27 = vpack.c.bf16 %v809_v25, %v809_v25 }
  0xb0   :  { %v592_v9 = vsel %vm176_vm12, 0.0, %v560_v6  ;;  %v593_v10 = vsel %vm177_vm8, 0.0, %v561_v7 }
  0xb1   :  { %v656_v11 = vsub.f32 0.0, %v592_v9  ;;  %v657_v12 = vsub.f32 0.0, %v593_v10 }
  0xb3   :  { %v688_v13 = vsel %vm624_vm2, %v656_v11, %v592_v9  ;;  %v689_v15 = vsel %vm625_vm5, %v657_v12, %v593_v10 }
  0xb4   :  { %v724_v20 = vmul.f32 %v1666_v63, %v688_v13  ;;  %v725_v21 = vmul.f32 %v1666_v63, %v689_v15 }
  0xb6   :  { %v1063_v22 = vld [vmem:[#allocation3 + $0x30] sm:$0xff]  ;;  %v1122_v23 = vpack.c.bf16 %v725_v21, %v724_v20 }
  0xb7   :  { %950 = vmatpush.bf16.msra.mxu0 %v1063_v22 }
  0xb8   :  { %1166 = vst [vmem:[#allocation3 + $0x40] sm:$0xff] %v1122_v23  }
  0xba   :  { %951 = vmatmul.bf16.vlgmr.msra.gmra.mxu0 %v810_v24 }
  0xbf   :  { %v1071_v26 = vld [vmem:[#allocation3 + $0x40] sm:$0xff] }
  0xc0   :  { %963 = vmatpush.bf16.msra.mxu1 %v1071_v26 }
  0xc3   :  { %964 = vmatmul.bf16.vlgmr.msra.gmra.mxu1 %v811_v27 }
 0x137   :  { %v952_v29 = vpop.f32.mrf.mxu0 }
 0x13f   :  { %v954_v30 = vpop.f32.mrf.mxu0 }
 0x140   :  { %v965_v32 = vpop.f32.mrf.mxu1 }
 0x141   :  { %v966_v63 = vadd.f32 %v965_v32, %v952_v29 }
 0x143   :  { %v979_v28 = vadd.f32 %v1182_v31, %v966_v63 }
 0x145   :  { %980 = vst [vmem:[#allocation9] sm:$0xff] %v979_v28 }
 0x146   :  { %991 = dma.vmem_to_hbm [thread:$0]  %s987_s12, 128, %s989_s15, [#allocation6]  }
 0x148   :  { %v967_v33 = vpop.f32.mrf.mxu1 }
 0x149   :  { %1261 = dma.done.wait [#allocation6], 128  }
 0x14a   :  { %1262 = vsyncadd [#allocation6], 4294967168 }
 0x14b   :  { %996 = vsyncpa [#allocation5], 1 }
 0x14c   :  { %997 = vsyncpa [#allocation8], 1 }
 0x14d   :  { %998 = vsyncpa [#allocation6], 1 }

</bundles_post_ra>
